<compile_context>
chip_gen: v6e
topology: v6e:2x2x1
jax: 0.10.0
libtpu: 0.0.40
codegen_flags: <defaults>
</compile_context>

<pallas_src>
import math
import functools

import jax
import jax.numpy as jnp
import numpy as np
from jax.experimental import pallas as pl
from jax.experimental.pallas import tpu as pltpu


# ---------------------------------------------------------------------------
# Pallas kernel: fused 3-layer MLP  (Linear+ReLU, Linear+ReLU, Linear)
# Matches Prober(embedding=E, arch="H1-H2", output_shape) -> out_dim=prod(shape)
# ---------------------------------------------------------------------------
def prober_mlp_kernel(e_ref, w1_ref, b1_ref, w2_ref, b2_ref, w3_ref, b3_ref,
                      out_ref):
    # f32 input straight from HBM; cast to bf16 in-kernel (free on the VPU,
    # saves a separate wrapper-side HBM pass).
    x = e_ref[...].astype(w1_ref.dtype)                        # (Bt, E) bf16

    # Layer 1: Linear(E -> H1p) + ReLU  (MXU bf16, accumulate f32, VPU f32)
    h1 = jnp.dot(x, w1_ref[...], preferred_element_type=jnp.float32)
    h1 = jnp.maximum(h1 + b1_ref[...], 0.0)                    # (Bt, 128) f32
    h1 = h1.astype(w2_ref.dtype)                               # bf16 for MXU

    # Layer 2: Linear(H1p -> H2p) + ReLU   (zero-padded lanes stay exactly 0)
    h2 = jnp.dot(h1, w2_ref[...], preferred_element_type=jnp.float32)
    h2 = jnp.maximum(h2 + b2_ref[...], 0.0)
    h2 = h2.astype(w3_ref.dtype)

    # Layer 3 (final): Linear(H2p -> out_dim), no activation.
    # w3 keeps only the real out_dim columns, so we store exactly out_dim
    # lanes -- no padded-f32 writeback, no wrapper-side slice.
    y = jnp.dot(h2, w3_ref[...], preferred_element_type=jnp.float32)
    y = y + b3_ref[...]

    out_ref[...] = y.astype(out_ref.dtype)


def _round_up(x, m):
    return ((x + m - 1) // m) * m


# ---------------------------------------------------------------------------
# One-time parameter prep: lane-pad hidden dims to 128, cast MXU operands to
# bf16. Do this once (outside the per-call hot path) -- zero-padded lanes of
# h1/h2 are provably 0 (relu(0 + 0)) so they never contaminate real outputs.
# ---------------------------------------------------------------------------
def prepare_prober_params(params, compute_dtype=jnp.bfloat16):
    E, H1 = params["w1"].shape
    H2, out_dim = params["w3"].shape
    H1p = max(128, _round_up(H1, 128))
    H2p = max(128, _round_up(H2, 128))

    w1 = jnp.pad(params["w1"], ((0, 0), (0, H1p - H1))).astype(compute_dtype)
    b1 = jnp.pad(params["b1"], ((0, 0), (0, H1p - H1))).astype(jnp.float32)
    w2 = jnp.pad(params["w2"], ((0, H1p - H1), (0, H2p - H2))).astype(compute_dtype)
    b2 = jnp.pad(params["b2"], ((0, 0), (0, H2p - H2))).astype(jnp.float32)
    w3 = jnp.pad(params["w3"], ((0, H2p - H2), (0, 0))).astype(compute_dtype)
    b3 = params["b3"].astype(jnp.float32)
    return {"w1": w1, "b1": b1, "w2": w2, "b2": b2, "w3": w3, "b3": b3}


# ---------------------------------------------------------------------------
# Wrapper: exactly one pallas_call, no surrounding pad / cast / slice ops.
# ---------------------------------------------------------------------------
def prober_forward(e, p, *, b_tile=2048):
    """Run the fused Prober MLP on TPU via Pallas.

    e: (B, E) float32
    p: dict from prepare_prober_params (lane-padded, bf16 weights, f32 biases)
    """
    B, E = e.shape
    out_dim = p["w3"].shape[1]

    # Batch tile: multiple of 8, capped at 8192 (v5e 16 MiB scoped-VMEM
    # default; raise vmem_limit_bytes if you ever need bigger tiles).
    bt = _round_up(min(b_tile, B, 8192), 8)
    # v7x megacore: for large batches keep >= 2 steps on the "parallel" axis
    # so both TensorCores get work.
    if B >= 1024 and pl.cdiv(B, bt) < 2:
        bt = _round_up(pl.cdiv(B, 2), 8)

    grid = (pl.cdiv(B, bt),)                       # partial last tile is masked

    const = lambda a: pl.BlockSpec(a.shape, lambda i: (0, 0))   # resident

    return pl.pallas_call(
        prober_mlp_kernel,
        out_shape=jax.ShapeDtypeStruct((B, out_dim), jnp.float32),
        grid=grid,
        in_specs=[
            pl.BlockSpec((bt, E), lambda i: (i, 0)),            # batch-tiled
            const(p["w1"]), const(p["b1"]),
            const(p["w2"]), const(p["b2"]),
            const(p["w3"]), const(p["b3"]),
        ],
        out_specs=pl.BlockSpec((bt, out_dim), lambda i: (i, 0)),
        compiler_params=pltpu.CompilerParams(
            dimension_semantics=("parallel",)),                 # megacore on v7x
    )(e, p["w1"], p["b1"], p["w2"], p["b2"], p["w3"], p["b3"])


# ---------------------------------------------------------------------------
# Deterministic parameter init (mirrors torch.nn.Linear default init ranges)
# ---------------------------------------------------------------------------
def init_linear(key, fan_in, fan_out):
    kw, kb = jax.random.split(key)
    bound = 1.0 / math.sqrt(fan_in)
    # Stored transposed relative to PyTorch: (in, out)
    w = jax.random.uniform(kw, (fan_in, fan_out), jnp.float32, -bound, bound)
    b = jax.random.uniform(kb, (1, fan_out), jnp.float32, -bound, bound)
    return w, b


def make_prober_params(key, embedding, arch, output_shape):
    output_dim = int(np.prod(output_shape))
    arch_list = list(map(int, arch.split('-'))) if arch != '' else []
    f = [embedding] + arch_list + [output_dim]
    assert len(f) == 4, "this fused kernel is written for arch with 2 hidden layers"
    keys = jax.random.split(key, 3)
    w1, b1 = init_linear(keys[0], f[0], f[1])
    w2, b2 = init_linear(keys[1], f[1], f[2])
    w3, b3 = init_linear(keys[2], f[2], f[3])
    return {"w1": w1, "b1": b1, "w2": w2, "b2": b2, "w3": w3, "b3": b3}


def prober_reference_f32(e, p):
    """Pure-JAX f32 reference of Prober.forward."""
    h = jnp.maximum(e @ p["w1"] + p["b1"], 0.0)
    h = jnp.maximum(h @ p["w2"] + p["b2"], 0.0)
    return h @ p["w3"] + p["b3"]


def prober_reference_mixed(e, p, compute_dtype=jnp.bfloat16):
    """Reference with the same bf16-operand / f32-accumulate convention."""
    x = e.astype(compute_dtype)
    h = jnp.dot(x, p["w1"].astype(compute_dtype),
                preferred_element_type=jnp.float32) + p["b1"]
    h = jnp.maximum(h, 0.0).astype(compute_dtype)
    h = jnp.dot(h, p["w2"].astype(compute_dtype),
                preferred_element_type=jnp.float32) + p["b2"]
    h = jnp.maximum(h, 0.0).astype(compute_dtype)
    return jnp.dot(h, p["w3"].astype(compute_dtype),
                   preferred_element_type=jnp.float32) + p["b3"]


if __name__ == "__main__":
    # Prober(embedding=32, arch="64-32", output_shape=[2, 2]) -> output_dim=4
    embedding = 32
    arch = "64-32"
    output_shape = [2, 2]

    key = jax.random.PRNGKey(0)
    k_e, k_p, k_e2, k_e3 = jax.random.split(key, 4)
    params = make_prober_params(k_p, embedding, arch, output_shape)
    prepped = prepare_prober_params(params)      # one-time, outside hot path
    out_dim = int(np.prod(output_shape))

    fwd = jax.jit(functools.partial(prober_forward, b_tile=2048))

    # --- small batch (the module's typical usage): single pallas_call, no
    # --- surrounding pad / cast / slice XLA ops ------------------------------
    batch = 8
    e = jax.random.normal(k_e, (batch, embedding), dtype=jnp.float32)
    out = jax.block_until_ready(fwd(e, prepped))
    assert out.shape == (batch, out_dim)
    ref_mixed = prober_reference_mixed(e, params)
    ref_f32 = prober_reference_f32(e, params)
    np.testing.assert_allclose(np.asarray(out), np.asarray(ref_mixed),
                               rtol=1e-3, atol=1e-3)
    np.testing.assert_allclose(np.asarray(out), np.asarray(ref_f32),
                               rtol=3e-2, atol=3e-2)

    # --- larger batch: exercises the batch grid / megacore split -------------
    batch2 = 1024
    e2 = jax.random.normal(k_e2, (batch2, embedding), dtype=jnp.float32)
    out2 = jax.block_until_ready(fwd(e2, prepped))
    assert out2.shape == (batch2, out_dim)
    ref2 = prober_reference_mixed(e2, params)
    np.testing.assert_allclose(np.asarray(out2), np.asarray(ref2),
                               rtol=1e-3, atol=1e-3)

    # --- ragged batch with a small tile: exercises the masked partial tile ---
    fwd_ragged = jax.jit(functools.partial(prober_forward, b_tile=256))
    batch3 = 1000
    e3 = jax.random.normal(k_e3, (batch3, embedding), dtype=jnp.float32)
    out3 = jax.block_until_ready(fwd_ragged(e3, prepped))
    assert out3.shape == (batch3, out_dim)
    ref3 = prober_reference_mixed(e3, params)
    np.testing.assert_allclose(np.asarray(out3), np.asarray(ref3),
                               rtol=1e-3, atol=1e-3)

    print("KERNEL_OK")
</pallas_src>

<mosaic_0001>
module attributes {stable_mosaic.version = 11 : i64} {
  func.func @prober_mlp_kernel(%arg0: i32, %arg1: memref<8x32xf32, #tpu.memory_space<vmem>>, %arg2: memref<32x128xbf16, #tpu.memory_space<vmem>>, %arg3: memref<1x128xf32, #tpu.memory_space<vmem>>, %arg4: memref<128x128xbf16, #tpu.memory_space<vmem>>, %arg5: memref<1x128xf32, #tpu.memory_space<vmem>>, %arg6: memref<128x4xbf16, #tpu.memory_space<vmem>>, %arg7: memref<1x4xf32, #tpu.memory_space<vmem>>, %arg8: memref<8x4xf32, #tpu.memory_space<vmem>>) attributes {dimension_semantics = [#tpu.dimension_semantics<parallel>], iteration_bounds = array<i64: 1>, scalar_prefetch = 0 : i64, scratch_operands = 0 : i64, tpu.core_type = #tpu.core_type<tc>, window_params = [{transform_indices = @transform_0, window_bounds = array<i64: 8, 32>}, {pipeline_mode = #tpu.pipeline_mode<synchronous>, transform_indices = @transform_1, window_bounds = array<i64: 32, 128>}, {pipeline_mode = #tpu.pipeline_mode<synchronous>, transform_indices = @transform_2, window_bounds = array<i64: 1, 128>}, {pipeline_mode = #tpu.pipeline_mode<synchronous>, transform_indices = @transform_3, window_bounds = array<i64: 128, 128>}, {pipeline_mode = #tpu.pipeline_mode<synchronous>, transform_indices = @transform_4, window_bounds = array<i64: 1, 128>}, {pipeline_mode = #tpu.pipeline_mode<synchronous>, transform_indices = @transform_5, window_bounds = array<i64: 128, 4>}, {pipeline_mode = #tpu.pipeline_mode<synchronous>, transform_indices = @transform_6, window_bounds = array<i64: 1, 4>}, {transform_indices = @transform_7, window_bounds = array<i64: 8, 4>}]} {
    %c0 = arith.constant 0 : index
    %c0_0 = arith.constant 0 : index
    %0 = vector.load %arg1[%c0, %c0_0] : memref<8x32xf32, #tpu.memory_space<vmem>>, vector<8x32xf32>
    %1 = arith.truncf %0 : vector<8x32xf32> to vector<8x32xbf16>
    %c0_1 = arith.constant 0 : index
    %c0_2 = arith.constant 0 : index
    %2 = vector.load %arg2[%c0_1, %c0_2] : memref<32x128xbf16, #tpu.memory_space<vmem>>, vector<32x128xbf16>
    %cst = arith.constant dense<0.000000e+00> : vector<8x128xf32>
    %3 = tpu.matmul %1, %2, %cst {dimension_numbers = #tpu.dot_dimension_numbers<[1], [0], [0], [1], [0, 0, 1, 1], [], []>} : vector<8x32xbf16>, vector<32x128xbf16>, vector<8x128xf32> -> vector<8x128xf32>
    %c0_3 = arith.constant 0 : index
    %c0_4 = arith.constant 0 : index
    %4 = vector.load %arg3[%c0_3, %c0_4] : memref<1x128xf32, #tpu.memory_space<vmem>>, vector<1x128xf32>
    %5 = vector.broadcast %4 : vector<1x128xf32> to vector<8x128xf32>
    %6 = arith.addf %3, %5 : vector<8x128xf32>
    %cst_5 = arith.constant 0.000000e+00 : f32
    %7 = vector.broadcast %cst_5 : f32 to vector<8x128xf32>
    %8 = arith.maximumf %6, %7 : vector<8x128xf32>
    %9 = arith.truncf %8 : vector<8x128xf32> to vector<8x128xbf16>
    %c0_6 = arith.constant 0 : index
    %c0_7 = arith.constant 0 : index
    %10 = vector.load %arg4[%c0_6, %c0_7] : memref<128x128xbf16, #tpu.memory_space<vmem>>, vector<128x128xbf16>
    %cst_8 = arith.constant dense<0.000000e+00> : vector<8x128xf32>
    %11 = tpu.matmul %9, %10, %cst_8 {dimension_numbers = #tpu.dot_dimension_numbers<[1], [0], [0], [1], [0, 0, 1, 1], [], []>} : vector<8x128xbf16>, vector<128x128xbf16>, vector<8x128xf32> -> vector<8x128xf32>
    %c0_9 = arith.constant 0 : index
    %c0_10 = arith.constant 0 : index
    %12 = vector.load %arg5[%c0_9, %c0_10] : memref<1x128xf32, #tpu.memory_space<vmem>>, vector<1x128xf32>
    %13 = vector.broadcast %12 : vector<1x128xf32> to vector<8x128xf32>
    %14 = arith.addf %11, %13 : vector<8x128xf32>
    %cst_11 = arith.constant 0.000000e+00 : f32
    %15 = vector.broadcast %cst_11 : f32 to vector<8x128xf32>
    %16 = arith.maximumf %14, %15 : vector<8x128xf32>
    %17 = arith.truncf %16 : vector<8x128xf32> to vector<8x128xbf16>
    %c0_12 = arith.constant 0 : index
    %c0_13 = arith.constant 0 : index
    %18 = vector.load %arg6[%c0_12, %c0_13] : memref<128x4xbf16, #tpu.memory_space<vmem>>, vector<128x4xbf16>
    %cst_14 = arith.constant dense<0.000000e+00> : vector<8x4xf32>
    %19 = tpu.matmul %17, %18, %cst_14 {dimension_numbers = #tpu.dot_dimension_numbers<[1], [0], [0], [1], [0, 0, 1, 1], [], []>} : vector<8x128xbf16>, vector<128x4xbf16>, vector<8x4xf32> -> vector<8x4xf32>
    %c0_15 = arith.constant 0 : index
    %c0_16 = arith.constant 0 : index
    %20 = vector.load %arg7[%c0_15, %c0_16] : memref<1x4xf32, #tpu.memory_space<vmem>>, vector<1x4xf32>
    %21 = vector.broadcast %20 : vector<1x4xf32> to vector<8x4xf32>
    %22 = arith.addf %19, %21 : vector<8x4xf32>
    %c0_17 = arith.constant 0 : index
    %c0_18 = arith.constant 0 : index
    %23 = vector.load %arg8[%c0_17, %c0_18] : memref<8x4xf32, #tpu.memory_space<vmem>>, vector<8x4xf32>
    tpu.vector_store %arg8[%c0_17, %c0_18], %22 {strides = array<i32>} : memref<8x4xf32, #tpu.memory_space<vmem>>, vector<8x4xf32>,
    return
  }
  func.func @transform_0(%arg0: i32) -> (i32, i32) {
    %c0_i32 = arith.constant 0 : i32
    %c0_i32_0 = arith.constant 0 : i32
    return %arg0, %c0_i32 : i32, i32
  }
  func.func @transform_1(%arg0: i32) -> (i32, i32) {
    %c0_i32 = arith.constant 0 : i32
    %c0_i32_0 = arith.constant 0 : i32
    %c0_i32_1 = arith.constant 0 : i32
    return %c0_i32, %c0_i32_0 : i32, i32
  }
  func.func @transform_2(%arg0: i32) -> (i32, i32) {
    %c0_i32 = arith.constant 0 : i32
    %c0_i32_0 = arith.constant 0 : i32
    %c0_i32_1 = arith.constant 0 : i32
    return %c0_i32, %c0_i32_0 : i32, i32
  }
  func.func @transform_3(%arg0: i32) -> (i32, i32) {
    %c0_i32 = arith.constant 0 : i32
    %c0_i32_0 = arith.constant 0 : i32
    %c0_i32_1 = arith.constant 0 : i32
    return %c0_i32, %c0_i32_0 : i32, i32
  }
  func.func @transform_4(%arg0: i32) -> (i32, i32) {
    %c0_i32 = arith.constant 0 : i32
    %c0_i32_0 = arith.constant 0 : i32
    %c0_i32_1 = arith.constant 0 : i32
    return %c0_i32, %c0_i32_0 : i32, i32
  }
  func.func @transform_5(%arg0: i32) -> (i32, i32) {
    %c0_i32 = arith.constant 0 : i32
    %c0_i32_0 = arith.constant 0 : i32
    %c0_i32_1 = arith.constant 0 : i32
    return %c0_i32, %c0_i32_0 : i32, i32
  }
  func.func @transform_6(%arg0: i32) -> (i32, i32) {
    %c0_i32 = arith.constant 0 : i32
    %c0_i32_0 = arith.constant 0 : i32
    %c0_i32_1 = arith.constant 0 : i32
    return %c0_i32, %c0_i32_0 : i32, i32
  }
  func.func @transform_7(%arg0: i32) -> (i32, i32) {
    %c0_i32 = arith.constant 0 : i32
    %c0_i32_0 = arith.constant 0 : i32
    return %arg0, %c0_i32 : i32, i32
  }
}

</mosaic_0001>

<bundles_post_ra>
// kernel: prober_forward.1
= control target key start
LH: loop header
LB: loop body
LE: loop exit
PB: predicated region body
PF: predicated region fallthrough
CT: control target
= control target key end

     0   :  { %12 = vsyncpa [#allocation3], 0  ;;  %s651_s0 = inlined_call_operand.vmem [shape: f32[8,32], index: 0, kind: input, shape index: {}]   ;;  %s652_s1 = inlined_call_operand.hbm [shape: bf16[32,128], index: 1, kind: input, shape index: {}]   ;;  %s653_s2 = inlined_call_operand.vmem [shape: f32[1,128], index: 2, kind: input, shape index: {}]   ;;  %s654_s3 = inlined_call_operand.vmem [shape: bf16[128,128], index: 3, kind: input, shape index: {}]   ;;  %s655_s4 = inlined_call_operand.vmem [shape: f32[1,128], index: 4, kind: input, shape index: {}]   ;;  %s656_s5 = inlined_call_operand.vmem [shape: bf16[128,4], index: 5, kind: input, shape index: {}]   ;;  %s657_s6 = inlined_call_operand.hbm [shape: f32[1,4], index: 6, kind: input, shape index: {}]   ;;  %s658_s7 = inlined_call_operand.vmem [shape: f32[8,4], index: 7, kind: output, shape index: {}]  }
   0x1   :  { %13 = vsyncpa [#allocation5], 0  ;;  %s515_s24 = smov [#allocation2]  }
   0x2   :  { %s21_s25 = sshll.u32 %s515_s24, 4  ;;  %s22_s25 = int_to_ptr.vmem [resolvable:$true] %s21_s25 }
   0x3   :  { %s479_s26 = scalar_lea.vmem %s22_s25, 256  ;;  %p484_p1 = scmp.lt.s32.totalorder %s22_s25, %s22_s25 }
   0x4   :  { %p480_p0 = scmp.ne.s32.totalorder %s22_s25, %s479_s26  ;;  %p485_p2 = scmp.lt.s32.totalorder %s479_s26, %s479_s26 }
   0x6   :  { %p486_p3 = por %p485_p2, %p484_p1 }
   0x8   :  { %p487_p4 = pnand %p486_p3, %p480_p0 }
   0xa   :  { %490 = shalt.err (!%p487_p4)
}
   0xb   :  { %s516_s27 = smov 64   ;;  %s517_s28 = smov 4  }
   0xc   :  { %27 = dma.hbm_to_vmem [thread:$0]  %s652_s1, 256, %s22_s25, [#allocation3], %s516_s27, %s516_s27, %s517_s28  }
   0xd   :  { %s518_s8 = smov [#allocation4]  }
   0xe   :  { %s42_s9 = sshll.u32 %s518_s8, 4  ;;  %s43_s9 = int_to_ptr.vmem [resolvable:$true] %s42_s9 }
   0xf   :  { %s499_s10 = scalar_lea.vmem %s43_s9, 16  ;;  %s503_s11 = scalar_lea.vmem %s43_s9, 32 }
  0x10   :  { %p500_p5 = scmp.ne.s32.totalorder %s43_s9, %s499_s10  ;;  %p504_p6 = scmp.lt.s32.totalorder %s43_s9, %s43_s9 }
  0x11   :  { %p505_p7 = scmp.lt.s32.totalorder %s503_s11, %s499_s10 }
  0x13   :  { %p506_p8 = por %p505_p7, %p504_p6 }
  0x15   :  { %p507_p9 = pnand %p506_p8, %p500_p5 }
  0x17   :  { %510 = shalt.err (!%p507_p9)
}
  0x18   :  { %45 = dma.hbm_to_vmem [thread:$0]  %s657_s6, 16, %s43_s9, [#allocation5]  }
  0x19   :  { %511 = dma.done.wait [#allocation3], 256  }
  0x1a   :  { %512 = vsyncadd [#allocation3], 4294967040 }
  0x1b   :  { %513 = dma.done.wait [#allocation5], 16  }
  0x1c   :  { %514 = vsyncadd [#allocation5], 4294967280  ;;  %v519_v0 = vmov 0.0   ;;  %vm520_vm0 = vmmov 0   ;;  %v453_v1 = vld [vmem:[#allocation2 + $0x8] sm:$0xff]   ;;  %v454_v2 = vld [vmem:[#allocation2] sm:$0xff]  }
  0x1d   :  { %399 = vmatprep.subr.bf16.mxu0 %v519_v0  ;;  %403 = vmatprep.mubr.msk.bf16.mxu0 %vm520_vm0, %v519_v0  ;;  %v53_v3 = vld [vmem:[%s651_s0] sm:$0xff]  ;;  %v455_v4 = vld [vmem:[%s654_s3 + $0x38] sm:$0xff]   ;;  %v456_v6 = vld [vmem:[%s654_s3 + $0x30] sm:$0xff]   ;;  %vm78_vm1 = vcmask 261120   ;;  %vm348_vm2 = vcmask 31744  }
  0x1e   :  { %407 = vmatprep.subr.bf16.mxu1 %v519_v0  ;;  %423 = vmatprep.mubr.msk.bf16.mxu1 %vm520_vm0, %v519_v0  ;;  %v54_v5 = vpack.c.bf16 %v53_v3, %v53_v3  ;;  %v457_v7 = vld [vmem:[%s654_s3 + $0x28] sm:$0xff]   ;;  %v458_v8 = vld [vmem:[%s654_s3 + $0x20] sm:$0xff]   ;;  %v459_v9 = vld [vmem:[%s654_s3 + $0x18] sm:$0xff]  }
  0x1f   :  { %400 = vmatpush3.bf16.msra.mxu0 %v453_v1  ;;  %408 = vmatpush3.bf16.msra.mxu1 %v455_v4  ;;  %v460_v10 = vld [vmem:[%s654_s3 + $0x10] sm:$0xff]   ;;  %v461_v11 = vld [vmem:[%s654_s3 + $0x8] sm:$0xff]   ;;  %v462_v12 = vld [vmem:[%s654_s3] sm:$0xff]  }
  0x20   :  { %401 = vmatprep.subr.bf16.mxu0 %v519_v0  ;;  %409 = vmatprep.subr.bf16.mxu1 %v519_v0  ;;  %v463_v13 = vld [vmem:[%s656_s5 + $0x38] sm:$0xff]   ;;  %v464_v14 = vld [vmem:[%s656_s5 + $0x30] sm:$0xff]   ;;  %v465_v15 = vld [vmem:[%s656_s5 + $0x28] sm:$0xff]  }
  0x21   :  { %v466_v16 = vld [vmem:[%s656_s5 + $0x20] sm:$0xff]   ;;  %v467_v17 = vld [vmem:[%s656_s5 + $0x18] sm:$0xff]   ;;  %v468_v18 = vld [vmem:[%s656_s5 + $0x10] sm:$0xff]  }
  0x22   :  { %v356_v19 = vld [vmem:[%s653_s2] ss:$0 sm:$0xff]  ;;  %v469_v27 = vld [vmem:[%s656_s5 + $0x8] sm:$0xff]   ;;  %v369_v37 = vld [vmem:[#allocation4] ss:$0 sm:$0xff] }
  0x23   :  { %402 = vmatpush3.bf16.msra.mxu0 %v454_v2  ;;  %410 = vmatpush3.bf16.msra.mxu1 %v456_v6  ;;  %v470_v28 = vld [vmem:[%s656_s5] sm:$0xff]  }
  0x24   :  { %427 = vmatprep.subr.bf16.mxu0 %v519_v0  ;;  %411 = vmatprep.subr.bf16.mxu1 %v519_v0  ;;  %v360_v29 = vld [vmem:[%s655_s4] ss:$0 sm:$0xff] }
  0x26   :  { %404 = vmatmul.mubr.msk.bf16.vlgmr.msra.gmra.mxu0 %vm78_vm1, %v54_v5 }
  0x27   :  { %443 = vmatprep.mubr.msk.bf16.mxu0 %vm520_vm0, %v519_v0  ;;  %412 = vmatpush3.bf16.msra.mxu1 %v457_v7 }
  0x28   :  { %413 = vmatprep.subr.bf16.mxu1 %v519_v0  ;;  %428 = vmatpush3.bf16.msra.mxu0 %v463_v13 }
  0x29   :  { %429 = vmatprep.subr.bf16.mxu0 %v519_v0 }
  0x2b   :  { %414 = vmatpush3.bf16.msra.mxu1 %v458_v8 }
  0x2c   :  { %415 = vmatprep.subr.bf16.mxu1 %v519_v0  ;;  %430 = vmatpush3.bf16.msra.mxu0 %v464_v14 }
  0x2d   :  { %431 = vmatprep.subr.bf16.mxu0 %v519_v0 }
  0x2f   :  { %416 = vmatpush3.bf16.msra.mxu1 %v459_v9 }
  0x30   :  { %417 = vmatprep.subr.bf16.mxu1 %v519_v0  ;;  %432 = vmatpush3.bf16.msra.mxu0 %v465_v15 }
  0x31   :  { %433 = vmatprep.subr.bf16.mxu0 %v519_v0 }
  0x33   :  { %418 = vmatpush3.bf16.msra.mxu1 %v460_v10 }
  0x34   :  { %419 = vmatprep.subr.bf16.mxu1 %v519_v0  ;;  %434 = vmatpush3.bf16.msra.mxu0 %v466_v16 }
  0x35   :  { %435 = vmatprep.subr.bf16.mxu0 %v519_v0 }
  0x37   :  { %420 = vmatpush3.bf16.msra.mxu1 %v461_v11 }
  0x38   :  { %421 = vmatprep.subr.bf16.mxu1 %v519_v0  ;;  %436 = vmatpush3.bf16.msra.mxu0 %v467_v17 }
  0x39   :  { %437 = vmatprep.subr.bf16.mxu0 %v519_v0 }
  0x3b   :  { %422 = vmatpush3.bf16.msra.mxu1 %v462_v12 }
  0x3c   :  { %438 = vmatpush3.bf16.msra.mxu0 %v468_v18 }
  0x3d   :  { %439 = vmatprep.subr.bf16.mxu0 %v519_v0 }
  0x40   :  { %440 = vmatpush3.bf16.msra.mxu0 %v469_v27 }
  0x41   :  { %441 = vmatprep.subr.bf16.mxu0 %v519_v0 }
  0x44   :  { %442 = vmatpush3.bf16.msra.mxu0 %v470_v28 }
  0xe6   :  { %v116_v20 = vpop.f32.mrf.mxu0 }
  0xe7   :  { %v117_v21 = vadd.f32 %v356_v19, %v116_v20 }
  0xe8   :  { %v405_v22 = vpop.f32.mrf.mxu0 }
  0xe9   :  { %v122_v23 = vmax.f32 %v117_v21, 0.0 }
  0xea   :  { %v119_v24 = vpop.f32.mrf.mxu0 }
  0xeb   :  { %v123_v25 = vpack.c.bf16 %v122_v23, %v122_v23 }
  0xec   :  { %v406_v26 = vpop.f32.mrf.mxu0 }
  0xed   :  { %424 = vmatmul.mubr.bf16.vlgmr.msra.gmra.mxu1 %v123_v25 }
 0x1ad   :  { %v229_v30 = vpop.f32.mrf.mxu1 }
 0x1ae   :  { %v230_v31 = vadd.f32 %v360_v29, %v229_v30 }
 0x1af   :  { %v425_v32 = vpop.f32.mrf.mxu1 }
 0x1b0   :  { %v235_v33 = vmax.f32 %v230_v31, 0.0 }
 0x1b1   :  { %v232_v34 = vpop.f32.mrf.mxu1 }
 0x1b2   :  { %v236_v35 = vpack.c.bf16 %v235_v33, %v235_v33 }
 0x1b3   :  { %v426_v36 = vpop.f32.mrf.mxu1 }
 0x1b4   :  { %444 = vmatmul.mubr.bf16.vlgmr.msra.gmra.mxu0 %v236_v35 }
 0x274   :  { %v342_v38 = vpop.f32.mrf.mxu0 }
 0x275   :  { %v343_v39 = vadd.f32 %v369_v37, %v342_v38 }
 0x276   :  { %v445_v40 = vpop.f32.mrf.mxu0 }
 0x277   :  { %349 = vst.msk [vmem:[%s658_s7] sm:$0xff] %vm348_vm2, %v343_v39 }
 0x278   :  { %v345_v41 = vpop.f32.mrf.mxu0 }
 0x27a   :  { %v446_v42 = vpop.f32.mrf.mxu0 }
 0x27b   :  { %354 = vsyncpa [#allocation3], 1 }
 0x27c   :  { %355 = vsyncpa [#allocation5], 1 }

</bundles_post_ra>
